<compile_context>
chip_gen: v7x
topology: tpu7x:2x2x1
jax: 0.10.0
libtpu: 0.0.40
codegen_flags: <defaults>
</compile_context>

<pallas_src>
import functools

import jax
import jax.numpy as jnp
from jax.experimental import pallas as pl
from jax.experimental.pallas import tpu as pltpu

_LANE = 512        # lane-dense width (multiple of 128) -> full-lane, unmasked stores
_MAX_BLOCK_ROWS = 256  # 256 x 512 x 4B = 512 KiB/buffer; in+out double-buffered ~ 2 MiB


def _poly_cutoff_kernel(r_ref, o_ref, *, inv_rcut, p, c1, c2, c3):
    r = r_ref[...].astype(jnp.float32)          # (block_rows, _LANE), compute in f32
    rs = r * inv_rcut                           # r / cutoff as a single multiply
    rp = rs ** p                                # lax.integer_pow -> repeated VPU multiplies
    out = 1.0 - rp * (c1 - rs * (c2 - c3 * rs))  # Horner-factored polynomial
    out = jnp.where(rs < 1.0, out, 0.0)          # zero outside the cutoff radius
    o_ref[...] = out.astype(o_ref.dtype)


def polynomial_cutoff(r, *, cutoff, p: int = 6):
    """Pallas PolynomialCutoff forward. r: (...,) -> (...,) same shape & dtype."""
    if not p >= 2:
        raise ValueError(f"Exponent p={p} has to be >= 2.")

    orig_shape = r.shape
    dtype = r.dtype
    x = r.reshape(-1)                            # dtype-preserving: no f32 up-cast here
    n = x.shape[0]
    itemsize = jnp.dtype(dtype).itemsize
    sub = {4: 8, 2: 16, 1: 32}.get(itemsize, 8)  # sublane multiple for this dtype

    # Lane-dense repack: flat -> (rows_p, 512); pad rows only to the sublane multiple.
    rows = max(pl.cdiv(n, _LANE), 1)
    rows_p = pl.cdiv(rows, sub) * sub

    # Block-row selection: single block for tiny inputs; otherwise aim for >= 4 grid
    # steps (pipeline overlap + megacore on v7x), capped at _MAX_BLOCK_ROWS rows.
    if rows_p < 4 * sub:
        block_rows = rows_p
    else:
        block_rows = min(_MAX_BLOCK_ROWS, max(sub, (rows_p // 4) // sub * sub))

    total = rows_p * _LANE
    if total != n:
        # TODO(synk): for hot paths with non-multiple sizes, replace pad/slice with a
        # masked tail store + scalar-prefetched n to avoid the extra HBM passes.
        x = jnp.pad(x, (0, total - n))
    x2d = x.reshape(rows_p, _LANE)

    kern = functools.partial(
        _poly_cutoff_kernel,
        inv_rcut=float(1.0 / cutoff),
        p=int(p),
        c1=float((p + 1.0) * (p + 2.0) / 2.0),
        c2=float(p * (p + 2.0)),
        c3=float(p * (p + 1.0) / 2.0),
    )

    out2d = pl.pallas_call(
        kern,
        out_shape=jax.ShapeDtypeStruct((rows_p, _LANE), dtype),
        grid=(pl.cdiv(rows_p, block_rows),),
        in_specs=[pl.BlockSpec((block_rows, _LANE), lambda i: (i, 0))],
        out_specs=pl.BlockSpec((block_rows, _LANE), lambda i: (i, 0)),
        compiler_params=pltpu.CompilerParams(
            dimension_semantics=("parallel",)),
        cost_estimate=pl.CostEstimate(
            flops=13 * total,
            transcendentals=0,
            bytes_accessed=2 * total * itemsize),
    )(x2d)

    out = out2d.reshape(-1)
    if total != n:
        out = out[:n]
    return out.reshape(orig_shape)


def polynomial_cutoff_ref(r, cutoff, p=6.0):
    """Pure-JAX reference matching the PyTorch PolynomialCutoff.polynomial_cutoff."""
    p = float(p)
    rs = r.astype(jnp.float32) / cutoff
    out = (1.0
           - (p + 1.0) * (p + 2.0) / 2.0 * jnp.power(rs, p)
           + p * (p + 2.0) * jnp.power(rs, p + 1.0)
           - p * (p + 1.0) / 2.0 * jnp.power(rs, p + 2.0))
    return out * (rs < 1.0).astype(jnp.float32)


if __name__ == "__main__":
    key = jax.random.PRNGKey(0)
    cutoff = 5.0
    p = 6

    # distances in [0, 1.5*cutoff) so both sides of the (r/cutoff < 1) mask are hit;
    # force an exact zero and an exactly-at-cutoff value.
    r = jax.random.uniform(key, (2, 128), dtype=jnp.float32) * (1.5 * cutoff)
    r = r.at[0, 0].set(0.0)
    r = r.at[0, 1].set(cutoff)

    # float32 path
    y = polynomial_cutoff(r, cutoff=cutoff, p=p)
    y = jax.block_until_ready(y)
    y_ref = polynomial_cutoff_ref(r, cutoff, p)
    assert y.shape == r.shape and y.dtype == r.dtype
    assert jnp.allclose(y.astype(jnp.float32), y_ref, atol=1e-5, rtol=1e-5)

    # bfloat16 path (dtype-preserving I/O)
    r_bf = r.astype(jnp.bfloat16)
    y_bf = polynomial_cutoff(r_bf, cutoff=cutoff, p=p)
    y_bf = jax.block_until_ready(y_bf)
    y_bf_ref = polynomial_cutoff_ref(r_bf.astype(jnp.float32), cutoff, p)
    assert y_bf.shape == r_bf.shape and y_bf.dtype == jnp.bfloat16
    assert jnp.allclose(y_bf.astype(jnp.float32), y_bf_ref, atol=2e-2, rtol=2e-2)

    print("KERNEL_OK")
</pallas_src>

<mosaic_0001>
module attributes {stable_mosaic.version = 11 : i64} {
  func.func @_poly_cutoff_kernel(%arg0: i32, %arg1: memref<8x512xf32, #tpu.memory_space<vmem>>, %arg2: memref<8x512xf32, #tpu.memory_space<vmem>>) attributes {dimension_semantics = [#tpu.dimension_semantics<parallel>], iteration_bounds = array<i64: 1>, scalar_prefetch = 0 : i64, scratch_operands = 0 : i64, tpu.core_type = #tpu.core_type<tc>, window_params = [{transform_indices = @transform_0, window_bounds = array<i64: 8, 512>}, {transform_indices = @transform_1, window_bounds = array<i64: 8, 512>}]} {
    %c0 = arith.constant 0 : index
    %c0_0 = arith.constant 0 : index
    %0 = vector.load %arg1[%c0, %c0_0] : memref<8x512xf32, #tpu.memory_space<vmem>>, vector<8x512xf32>
    %cst = arith.constant 2.000000e-01 : f32
    %1 = vector.broadcast %cst : f32 to vector<8x512xf32>
    %2 = arith.mulf %0, %1 : vector<8x512xf32>
    %3 = arith.mulf %2, %2 : vector<8x512xf32>
    %4 = arith.mulf %3, %3 : vector<8x512xf32>
    %5 = arith.mulf %3, %4 : vector<8x512xf32>
    %cst_1 = arith.constant 2.100000e+01 : f32
    %6 = vector.broadcast %cst_1 : f32 to vector<8x512xf32>
    %7 = arith.mulf %6, %2 : vector<8x512xf32>
    %cst_2 = arith.constant 4.800000e+01 : f32
    %8 = vector.broadcast %cst_2 : f32 to vector<8x512xf32>
    %9 = arith.subf %8, %7 : vector<8x512xf32>
    %10 = arith.mulf %2, %9 : vector<8x512xf32>
    %cst_3 = arith.constant 2.800000e+01 : f32
    %11 = vector.broadcast %cst_3 : f32 to vector<8x512xf32>
    %12 = arith.subf %11, %10 : vector<8x512xf32>
    %13 = arith.mulf %5, %12 : vector<8x512xf32>
    %cst_4 = arith.constant 1.000000e+00 : f32
    %14 = vector.broadcast %cst_4 : f32 to vector<8x512xf32>
    %15 = arith.subf %14, %13 : vector<8x512xf32>
    %cst_5 = arith.constant 1.000000e+00 : f32
    %16 = vector.broadcast %cst_5 : f32 to vector<8x512xf32>
    %17 = arith.cmpf olt, %2, %16 : vector<8x512xf32>
    %cst_6 = arith.constant 0.000000e+00 : f32
    %18 = vector.broadcast %cst_6 : f32 to vector<8x512xf32>
    %19 = arith.select %17, %15, %18 : vector<8x512xi1>, vector<8x512xf32>
    %c0_7 = arith.constant 0 : index
    %c0_8 = arith.constant 0 : index
    %20 = vector.load %arg2[%c0_7, %c0_8] : memref<8x512xf32, #tpu.memory_space<vmem>>, vector<8x512xf32>
    tpu.vector_store %arg2[%c0_7, %c0_8], %19 {strides = array<i32>} : memref<8x512xf32, #tpu.memory_space<vmem>>, vector<8x512xf32>,
    return
  }
  func.func @transform_0(%arg0: i32) -> (i32, i32) {
    %c0_i32 = arith.constant 0 : i32
    %c0_i32_0 = arith.constant 0 : i32
    return %arg0, %c0_i32 : i32, i32
  }
  func.func @transform_1(%arg0: i32) -> (i32, i32) {
    %c0_i32 = arith.constant 0 : i32
    %c0_i32_0 = arith.constant 0 : i32
    return %arg0, %c0_i32 : i32, i32
  }
}

</mosaic_0001>

<bundles_post_ra>
// kernel: tpu_custom_call.1
= control target key start
LH: loop header
LB: loop body
LE: loop exit
PB: predicated region body
PF: predicated region fallthrough
CT: control target
= control target key end

     0   :  { %6 = vsyncpa [#allocation3], 0  ;;  %s178_s0 = inlined_call_operand.hbm [shape: f32[8,512], index: 0, kind: input, shape index: {}]   ;;  %s179_s1 = inlined_call_operand.hbm [shape: f32[8,512], index: 1, kind: output, shape index: {}]  }
   0x1   :  { %7 = vsyncpa [#allocation4], 0  ;;  %s142_s6 = smov [#allocation2]   ;;  %s94_s10 = scalar_lea.hbm %s178_s0, 512 }
   0x2   :  { %s14_s7 = sshll.u32 %s142_s6, 4  ;;  %p95_p0 = scmp.ne.s32.totalorder %s178_s0, %s94_s10  ;;  %s15_s7 = int_to_ptr.vmem [resolvable:$true] %s14_s7 }
   0x3   :  { %p98_p1 = scmp.lt.u32.totalorder %s94_s10, %s178_s0 }
   0x5   :  { %p100_p2 = pnand %p98_p1, %p95_p0 }
   0x7   :  { %103 = shalt.err (!%p100_p2)
}
   0x8   :  { %s104_s15 = scalar_lea.vmem %s15_s7, 512  ;;  %p109_p4 = scmp.lt.s32.totalorder %s15_s7, %s15_s7 }
   0x9   :  { %p105_p3 = scmp.ne.s32.totalorder %s15_s7, %s104_s15  ;;  %p110_p5 = scmp.lt.s32.totalorder %s104_s15, %s104_s15 }
   0xb   :  { %p111_p6 = por %p110_p5, %p109_p4 }
   0xd   :  { %p112_p7 = pnand %p111_p6, %p105_p3 }
   0xf   :  { %115 = shalt.err (!%p112_p7)
}
  0x10   :  { %17 = dma.hbm_to_vmem [thread:$0]  %s178_s0, 512, %s15_s7, [#allocation3]  }
  0x11   :  { %138 = dma.done.wait [#allocation3], 512  }
  0x12   :  { %139 = vsyncadd [#allocation3], 4294966784  ;;  %v21_v0 = vld [vmem:[#allocation2] sm:$0xff]  ;;  %v22_v1 = vld [vmem:[#allocation2 + $0x8] sm:$0xff]  ;;  %s143_s0 = smov [#allocation5]  }
  0x13   :  { %v23_v2 = vld [vmem:[#allocation2 + $0x10] sm:$0xff]  ;;  %v25_v3 = vmul.f32 0.2, %v21_v0  ;;  %v26_v4 = vmul.f32 0.2, %v22_v1  ;;  %v24_v9 = vld [vmem:[#allocation2 + $0x18] sm:$0xff] }
  0x14   :  { %v27_v5 = vmul.f32 0.2, %v23_v2  ;;  %v28_v19 = vmul.f32 0.2, %v24_v9  ;;  %s83_s18 = sshll.u32 %s143_s0, 4  ;;  %s84_s18 = int_to_ptr.vmem [resolvable:$true] %s83_s18 }
  0x15   :  { %v29_v6 = vmul.f32 %v25_v3, %v25_v3  ;;  %v41_v7 = vmul.f32 21.0, %v25_v3  ;;  %v30_v8 = vmul.f32 %v26_v4, %v26_v4  ;;  %v42_v10 = vmul.f32 21.0, %v26_v4  ;;  %s116_s19 = scalar_lea.vmem %s84_s18, 512  ;;  %p121_p9 = scmp.lt.s32.totalorder %s84_s18, %s84_s18 }
  0x16   :  { %v31_v11 = vmul.f32 %v27_v5, %v27_v5  ;;  %v43_v12 = vmul.f32 21.0, %v27_v5  ;;  %v32_v26 = vmul.f32 %v28_v19, %v28_v19  ;;  %v44_v28 = vmul.f32 21.0, %v28_v19  ;;  %p117_p8 = scmp.ne.s32.totalorder %s84_s18, %s116_s19  ;;  %p122_p10 = scmp.lt.s32.totalorder %s116_s19, %s116_s19 }
  0x17   :  { %v33_v13 = vmul.f32 %v29_v6, %v29_v6  ;;  %v45_v14 = vsub.f32 48.0, %v41_v7  ;;  %v34_v15 = vmul.f32 %v30_v8, %v30_v8  ;;  %v46_v16 = vsub.f32 48.0, %v42_v10 }
  0x18   :  { %v35_v17 = vmul.f32 %v31_v11, %v31_v11  ;;  %v47_v18 = vsub.f32 48.0, %v43_v12  ;;  %v36_v31 = vmul.f32 %v32_v26, %v32_v26  ;;  %v48_v33 = vsub.f32 48.0, %v44_v28  ;;  %p123_p11 = por %p122_p10, %p121_p9 }
  0x19   :  { %v37_v20 = vmul.f32 %v33_v13, %v29_v6  ;;  %v49_v21 = vmul.f32 %v45_v14, %v25_v3  ;;  %v38_v22 = vmul.f32 %v34_v15, %v30_v8  ;;  %v50_v23 = vmul.f32 %v46_v16, %v26_v4 }
  0x1a   :  { %v39_v24 = vmul.f32 %v35_v17, %v31_v11  ;;  %v51_v25 = vmul.f32 %v47_v18, %v27_v5  ;;  %vm65_vm0 = vcmp.lt.f32.partialorder %v25_v3, 1.0  ;;  %vm66_vm1 = vcmp.lt.f32.partialorder %v26_v4, 1.0  ;;  %p124_p12 = pnand %p123_p11, %p117_p8 }
  0x1b   :  { %v53_v27 = vsub.f32 28.0, %v49_v21  ;;  %v54_v29 = vsub.f32 28.0, %v50_v23  ;;  %vm67_vm2 = vcmp.lt.f32.partialorder %v27_v5, 1.0  ;;  %v40_v37 = vmul.f32 %v36_v31, %v32_v26 }
  0x1c   :  { %v55_v30 = vsub.f32 28.0, %v51_v25  ;;  %v52_v38 = vmul.f32 %v48_v33, %v28_v19  ;;  %vm68_vm3 = vcmp.lt.f32.partialorder %v28_v19, 1.0 }
  0x1d   :  { %v57_v32 = vmul.f32 %v53_v27, %v37_v20  ;;  %v58_v34 = vmul.f32 %v54_v29, %v38_v22 }
  0x1e   :  { %v59_v35 = vmul.f32 %v55_v30, %v39_v24  ;;  %v56_v42 = vsub.f32 28.0, %v52_v38 }
  0x1f   :  { %v61_v36 = vsub.f32 1.0, %v57_v32  ;;  %v62_v39 = vsub.f32 1.0, %v58_v34 }
  0x20   :  { %v63_v40 = vsub.f32 1.0, %v59_v35  ;;  %v60_v45 = vmul.f32 %v56_v42, %v40_v37 }
  0x21   :  { %v69_v41 = vsel %vm65_vm0, %v61_v36, 0.0  ;;  %v70_v43 = vsel %vm66_vm1, %v62_v39, 0.0 }
  0x22   :  { %73 = vst [vmem:[#allocation5] sm:$0xff] %v69_v41  ;;  %v71_v44 = vsel %vm67_vm2, %v63_v40, 0.0  ;;  %74 = vst [vmem:[#allocation5 + $0x8] sm:$0xff] %v70_v43  ;;  %v64_v46 = vsub.f32 1.0, %v60_v45 }
  0x23   :  { %75 = vst [vmem:[#allocation5 + $0x10] sm:$0xff] %v71_v44 }
  0x24   :  { %v72_v47 = vsel %vm68_vm3, %v64_v46, 0.0 }
  0x25   :  { %76 = vst [vmem:[#allocation5 + $0x18] sm:$0xff] %v72_v47 }
  0x26   :  { %127 = shalt.err (!%p124_p12)
}
  0x27   :  { %s128_s22 = scalar_lea.hbm %s179_s1, 512 }
  0x28   :  { %p129_p13 = scmp.ne.s32.totalorder %s179_s1, %s128_s22  ;;  %p132_p0 = scmp.lt.u32.totalorder %s128_s22, %s179_s1 }
  0x2a   :  { %p134_p1 = pnand %p132_p0, %p129_p13 }
  0x2c   :  { %137 = shalt.err (!%p134_p1)
}
  0x2d   :  { %86 = dma.vmem_to_hbm [thread:$0]  %s84_s18, 512, %s179_s1, [#allocation4]  }
  0x2e   :  { %140 = dma.done.wait [#allocation4], 512  }
  0x2f   :  { %141 = vsyncadd [#allocation4], 4294966784 }
  0x30   :  { %90 = vsyncpa [#allocation3], 1 }
  0x31   :  { %91 = vsyncpa [#allocation4], 1 }

</bundles_post_ra>
